<compile_context>
chip_gen: v6e
topology: v6e:2x2x1
jax: 0.10.0
libtpu: 0.0.40
codegen_flags: <defaults>
</compile_context>

<pallas_src>
import functools

import jax
import jax.numpy as jnp
from jax import lax
from jax.experimental import pallas as pl
from jax.experimental.pallas import tpu as pltpu


# ----------------------------------------------------------------------------
# helpers
# ----------------------------------------------------------------------------
def get_sinusoid_encoding_table(n_position, d_hid):
    position = jnp.arange(n_position, dtype=jnp.float32)[:, None]             # (N,1)
    div = jnp.power(10000.0,
                    2.0 * (jnp.arange(d_hid) // 2).astype(jnp.float32) / d_hid)
    table = position / div[None, :]                                           # (N,D)
    out = jnp.zeros((n_position, d_hid), jnp.float32)
    out = out.at[:, 0::2].set(jnp.sin(table[:, 0::2]))
    out = out.at[:, 1::2].set(jnp.cos(table[:, 1::2]))
    return out


def xavier_uniform(key, shape):
    fan_in, fan_out = shape
    bound = (6.0 / (fan_in + fan_out)) ** 0.5
    return jax.random.uniform(key, shape, jnp.float32, -bound, bound)


def _layernorm(x, g, b, eps):
    mu = jnp.mean(x, axis=-1, keepdims=True)
    xc = x - mu
    var = jnp.mean(xc * xc, axis=-1, keepdims=True)
    return xc * lax.rsqrt(var + eps) * g + b


def _erf_approx(x):
    # Abramowitz & Stegun 7.1.26 (|err| < 1.5e-7).  Keeps nn.GELU's erf
    # semantics using only exp/mul/add/where (all have Mosaic lowerings).
    p = 0.3275911
    a1, a2, a3, a4, a5 = (0.254829592, -0.284496736, 1.421413741,
                          -1.453152027, 1.061405429)
    sgn = jnp.where(x >= 0, 1.0, -1.0).astype(x.dtype)
    ax = jnp.abs(x)
    t = 1.0 / (1.0 + p * ax)
    poly = ((((a5 * t + a4) * t + a3) * t + a2) * t + a1) * t
    return sgn * (1.0 - poly * jnp.exp(-ax * ax))


def _gelu_erf(x):
    return 0.5 * x * (1.0 + _erf_approx(x * 0.7071067811865476))


def _pick_vmem_limit_bytes():
    # v5e/v6e: 128 MiB physical -> cap ~100 MiB; v7x: 64 MiB -> cap ~56 MiB.
    try:
        cap = int(pltpu.get_tpu_info().vmem_capacity_bytes)
    except Exception:
        return 48 * 1024 * 1024
    return max(32 * 1024 * 1024, min(cap - 8 * 1024 * 1024, 100 * 1024 * 1024))


def _pick_mlp_chunk(hidden):
    if hidden <= 1024:
        return hidden
    for c in (1024, 768, 512, 384, 256, 128):
        if hidden % c == 0:
            return c
    return hidden


# ----------------------------------------------------------------------------
# kernel 1: patch-embed + pos-add (separate, so its inputs are not resident in
# VMEM during the whole encoder depth loop)
# ----------------------------------------------------------------------------
def patch_embed_kernel(patches_ref, pos_ref, pew_ref, peb_ref, o_ref):
    TB, Npad, P = patches_ref.shape
    D = o_ref.shape[-1]
    pf = patches_ref[...].reshape(TB * Npad, P)                               # bf16
    emb = jnp.dot(pf, pew_ref[...], preferred_element_type=jnp.float32)
    emb = emb + peb_ref[...]
    o_ref[...] = emb.reshape(TB, Npad, D) + pos_ref[...]


def patch_embed_call(patches, pos, pe_w, pe_b, *, tb, vmem_limit):
    B, Npad, P = patches.shape
    D = pe_w.shape[-1]
    return pl.pallas_call(
        patch_embed_kernel,
        out_shape=jax.ShapeDtypeStruct((B, Npad, D), jnp.float32),
        grid=(B // tb,),
        in_specs=[
            pl.BlockSpec((tb, Npad, P), lambda i: (i, 0, 0)),
            pl.BlockSpec((tb, Npad, D), lambda i: (i, 0, 0)),
            pl.BlockSpec((P, D), lambda i: (0, 0)),
            pl.BlockSpec((1, D), lambda i: (0, 0)),
        ],
        out_specs=pl.BlockSpec((tb, Npad, D), lambda i: (i, 0, 0)),
        compiler_params=pltpu.CompilerParams(
            dimension_semantics=("parallel",),
            vmem_limit_bytes=vmem_limit),
    )(patches, pos, pe_w, pe_b)


# ----------------------------------------------------------------------------
# kernel 2: fused transformer stack, grid = (batch_tiles, depth)
# ----------------------------------------------------------------------------
def encoder_stack_kernel(x0_ref, ln1g_ref, ln1b_ref, qkvw_ref,
                         projw_ref, projb_ref, ln2g_ref, ln2b_ref,
                         fc1w_ref, fc1b_ref, fc2w_ref, fc2b_ref,
                         ng_ref, nb_ref, o_ref,
                         act_ref, qkv_ref, attn_ref,
                         *, num_heads, n_vis, eps, mlp_chunk):
    d = pl.program_id(1)
    TB, Npad, D = act_ref.shape
    hd = D // num_heads
    hidden = fc1w_ref.shape[-1]

    # residual stream is initialized once per batch tile (d == 0)
    @pl.when(d == 0)
    def _():
        act_ref[...] = x0_ref[...]

    # ------------------------- attention branch -------------------------
    x = act_ref[...]                                                          # f32
    h = _layernorm(x, ln1g_ref[0], ln1b_ref[0], eps)
    hb = h.reshape(TB * Npad, D).astype(jnp.bfloat16)

    # one fused full-width QKV projection (MXU N-dim = 3D, not hd)
    qkv = jnp.dot(hb, qkvw_ref[0], preferred_element_type=jnp.float32)
    qkv_ref[...] = qkv.reshape(TB, Npad, 3 * D).astype(jnp.bfloat16)

    if Npad > n_vis:                                  # compile-time branch
        col = lax.broadcasted_iota(jnp.int32, (1, 1, Npad), 2)
        key_valid = col < n_vis

    # per-head scores/AV: batched over TB via einsum; static lane slices of the
    # qkv scratch ref (compile-time offsets), per-head result stored straight
    # to attn_ref so per-iteration live ranges stay bounded.
    for hh in range(num_heads):
        q_h = qkv_ref[:, :, hh * hd:(hh + 1) * hd]                # (TB,Npad,hd) bf16
        k_h = qkv_ref[:, :, D + hh * hd:D + (hh + 1) * hd]
        v_h = qkv_ref[:, :, 2 * D + hh * hd:2 * D + (hh + 1) * hd]
        s = jnp.einsum('bqd,bkd->bqk', q_h, k_h,
                       preferred_element_type=jnp.float32)        # scale folded in q_w
        if Npad > n_vis:
            s = jnp.where(key_valid, s, jnp.float32(-1e30))       # mask padded keys
        m = jnp.max(s, axis=-1, keepdims=True)
        e = jnp.exp(s - m)
        denom = jnp.sum(e, axis=-1, keepdims=True)
        pattn = (e * pl.reciprocal(denom, approx=True)).astype(jnp.bfloat16)
        oh = jnp.einsum('bqk,bkd->bqd', pattn, v_h,
                        preferred_element_type=jnp.float32)       # (TB,Npad,hd)
        attn_ref[:, :, hh * hd:(hh + 1) * hd] = oh.astype(jnp.bfloat16)

    # single full-width output projection over the head-major concat (K = D)
    proj = jnp.dot(attn_ref[...].reshape(TB * Npad, D), projw_ref[0],
                   preferred_element_type=jnp.float32)
    act_ref[...] = x + (proj + projb_ref[0]).reshape(TB, Npad, D)

    # ---------------------------- MLP branch ----------------------------
    x2 = act_ref[...]
    h2 = _layernorm(x2, ln2g_ref[0], ln2b_ref[0], eps)
    h2f = h2.reshape(TB * Npad, D).astype(jnp.bfloat16)
    y = jnp.zeros((TB * Npad, D), jnp.float32)
    for c0 in range(0, hidden, mlp_chunk):            # chunk hidden dim (VMEM cap)
        w1 = fc1w_ref[0, :, c0:c0 + mlp_chunk]
        b1 = fc1b_ref[0, :, c0:c0 + mlp_chunk]
        w2 = fc2w_ref[0, c0:c0 + mlp_chunk, :]
        t = jnp.dot(h2f, w1, preferred_element_type=jnp.float32) + b1
        t = _gelu_erf(t)                               # nn.GELU (erf) semantics
        y = y + jnp.dot(t.astype(jnp.bfloat16), w2,
                        preferred_element_type=jnp.float32)
    act_ref[...] = x2 + (y + fc2b_ref[0]).reshape(TB, Npad, D)

    # ------------- final LayerNorm folded into the last layer -------------
    @pl.when(d == pl.num_programs(1) - 1)
    def _():
        o_ref[...] = _layernorm(act_ref[...], ng_ref[...], nb_ref[...],
                                eps).astype(o_ref.dtype)


def encoder_stack_call(x0, params, *, num_heads, n_vis, tb, eps, vmem_limit):
    B, Npad, D = x0.shape
    depth = params['ln1_g'].shape[0]
    hidden = params['fc1_w'].shape[-1]
    assert B % tb == 0 and D % num_heads == 0
    mlp_chunk = _pick_mlp_chunk(hidden)

    grid = (B // tb, depth)
    bmap = lambda b, d: (b, 0, 0)                     # activation-like tensors
    wmap3 = lambda b, d: (d, 0, 0)                    # per-layer stacked weights
    cmap2 = lambda b, d: (0, 0)                       # layer-invariant params

    kern = functools.partial(encoder_stack_kernel, num_heads=num_heads,
                             n_vis=n_vis, eps=eps, mlp_chunk=mlp_chunk)
    return pl.pallas_call(
        kern,
        out_shape=jax.ShapeDtypeStruct((B, Npad, D), jnp.float32),
        grid=grid,
        in_specs=[
            pl.BlockSpec((tb, Npad, D), bmap),        # x0 (f32, embedded + pos)
            pl.BlockSpec((1, 1, D), wmap3),           # ln1 gamma
            pl.BlockSpec((1, 1, D), wmap3),           # ln1 beta
            pl.BlockSpec((1, D, 3 * D), wmap3),       # fused qkv W (bf16, q pre-scaled)
            pl.BlockSpec((1, D, D), wmap3),           # proj W (bf16)
            pl.BlockSpec((1, 1, D), wmap3),           # proj b
            pl.BlockSpec((1, 1, D), wmap3),           # ln2 gamma
            pl.BlockSpec((1, 1, D), wmap3),           # ln2 beta
            pl.BlockSpec((1, D, hidden), wmap3),      # fc1 W (bf16)
            pl.BlockSpec((1, 1, hidden), wmap3),      # fc1 b
            pl.BlockSpec((1, hidden, D), wmap3),      # fc2 W (bf16)
            pl.BlockSpec((1, 1, D), wmap3),           # fc2 b
            pl.BlockSpec((1, D), cmap2),              # final norm gamma
            pl.BlockSpec((1, D), cmap2),              # final norm beta
        ],
        out_specs=pl.BlockSpec((tb, Npad, D), bmap),
        scratch_shapes=[
            pltpu.VMEM((tb, Npad, D), jnp.float32),       # residual stream
            pltpu.VMEM((tb, Npad, 3 * D), jnp.bfloat16),  # staged q|k|v (head-major)
            pltpu.VMEM((tb, Npad, D), jnp.bfloat16),      # staged attention output
        ],
        compiler_params=pltpu.CompilerParams(
            dimension_semantics=("parallel", "arbitrary"),
            vmem_limit_bytes=vmem_limit),
    )(x0, params['ln1_g'], params['ln1_b'], params['qkv_w'],
      params['proj_w'], params['proj_b'], params['ln2_g'], params['ln2_b'],
      params['fc1_w'], params['fc1_b'], params['fc2_w'], params['fc2_b'],
      params['norm_g'], params['norm_b'])


# ----------------------------------------------------------------------------
# parameters (synthetic init matching the module's shapes / _init_weights)
# ----------------------------------------------------------------------------
def init_params(key, *, in_chans, patch_size, embed_dim, depth, num_heads,
                mlp_ratio, num_patches):
    P = in_chans * patch_size * patch_size
    D = embed_dim
    hd = D // num_heads
    hidden = int(D * mlp_ratio)
    scale = hd ** -0.5                                 # qk_scale=None -> hd^-0.5
    keys = jax.random.split(key, 2 + depth)
    kc = (1.0 / P) ** 0.5                              # conv default-ish bound
    pe_w = jax.random.uniform(keys[0], (P, D), jnp.float32, -kc, kc)
    pe_b = jax.random.uniform(keys[1], (1, D), jnp.float32, -kc, kc)
    pos = get_sinusoid_encoding_table(num_patches, D)  # fixed sinusoid table

    qkvw, projw, projb = [], [], []
    ln1g, ln1b, ln2g, ln2b = [], [], [], []
    f1w, f1b, f2w, f2b = [], [], [], []
    for i in range(depth):
        bk = jax.random.split(keys[2 + i], 4)
        qkv = xavier_uniform(bk[0], (D, 3 * D))        # qkv_bias=False
        # fold attention scale into the q columns (saves Npad^2 VPU mul/head/layer)
        qkv = jnp.concatenate([qkv[:, :D] * scale, qkv[:, D:]], axis=1)
        qkvw.append(qkv)
        projw.append(xavier_uniform(bk[1], (D, D)))
        projb.append(jnp.zeros((1, D), jnp.float32))
        ln1g.append(jnp.ones((1, D), jnp.float32)); ln1b.append(jnp.zeros((1, D), jnp.float32))
        ln2g.append(jnp.ones((1, D), jnp.float32)); ln2b.append(jnp.zeros((1, D), jnp.float32))
        f1w.append(xavier_uniform(bk[2], (D, hidden)))
        f1b.append(jnp.zeros((1, hidden), jnp.float32))
        f2w.append(xavier_uniform(bk[3], (hidden, D)))
        f2b.append(jnp.zeros((1, D), jnp.float32))

    st = lambda xs: jnp.stack(xs, 0)
    bf = lambda a: a.astype(jnp.bfloat16)              # bf16 weights in HBM
    return dict(
        pe_w=bf(pe_w), pe_b=pe_b, pos=pos,
        ln1_g=st(ln1g), ln1_b=st(ln1b),
        qkv_w=bf(st(qkvw)),
        proj_w=bf(st(projw)), proj_b=st(projb),
        ln2_g=st(ln2g), ln2_b=st(ln2b),
        fc1_w=bf(st(f1w)), fc1_b=st(f1b),
        fc2_w=bf(st(f2w)), fc2_b=st(f2b),
        norm_g=jnp.ones((1, D), jnp.float32),
        norm_b=jnp.zeros((1, D), jnp.float32),
    )


# ----------------------------------------------------------------------------
# forward (== PretrainVisionTransformerEncoder.forward, add_cls_token=False,
#          num_classes=0 -> head = Identity)
# ----------------------------------------------------------------------------
def encoder_forward(params, x, mask, *, patch_size, num_heads, n_vis,
                    tb=None, eps=1e-6):
    # x is NCHW, mask is (B, num_patches) bool, True == masked-out token.
    B, C, H, W = x.shape
    p = patch_size
    nh, nw = H // p, W // p
    N = nh * nw
    D = params['pos'].shape[-1]
    # Conv2d(stride=kernel=p) == patchify + matmul; flatten order (C, ph, pw)
    patches = (x.reshape(B, C, nh, p, nw, p)
                 .transpose(0, 2, 4, 1, 3, 5)
                 .reshape(B, N, C * p * p))

    # gather visible tokens BEFORE patch-embed (work scales with n_vis, not N)
    # TODO(synk): x[~mask] is dynamic-shape; implemented as a fixed-count gather
    # that assumes every mask row has exactly N - n_vis True entries.
    vis_idx = jnp.argsort(mask.astype(jnp.int32), axis=1, stable=True)[:, :n_vis]
    patches_vis = jnp.take_along_axis(patches, vis_idx[:, :, None], axis=1)
    pos_vis = jnp.take(params['pos'], vis_idx, axis=0)            # (B, n_vis, D)

    # pad sequence to a multiple of 128 (lane-dense scores / stores); padded
    # keys are masked in-kernel and padded rows dropped on output
    Npad = ((n_vis + 127) // 128) * 128
    n_pad = Npad - n_vis
    if n_pad:
        patches_vis = jnp.pad(patches_vis, ((0, 0), (0, n_pad), (0, 0)))
        pos_vis = jnp.pad(pos_vis, ((0, 0), (0, n_pad), (0, 0)))
    patches_vis = patches_vis.astype(jnp.bfloat16)

    if tb is None:
        # batch grid extent >= 2 lets v7x shard the parallel axis over its 2 TCs;
        # on v5e/v6e pass tb=B for maximal per-layer weight reuse.
        tb = B // 2 if (B % 2 == 0 and B >= 2) else B
    vmem_limit = _pick_vmem_limit_bytes()

    x0 = patch_embed_call(patches_vis, pos_vis, params['pe_w'], params['pe_b'],
                          tb=tb, vmem_limit=vmem_limit)
    out = encoder_stack_call(x0, params, num_heads=num_heads, n_vis=n_vis,
                             tb=tb, eps=eps, vmem_limit=vmem_limit)
    return out[:, :n_vis, :]                           # drop padding; head = Identity


# ----------------------------------------------------------------------------
if __name__ == "__main__":
    # small, consistent config: img 16x16, patch 4 -> 16 patches, dim 32
    B, C, H, W = 2, 4, 16, 16
    patch_size = 4
    embed_dim = 32
    depth = 2
    num_heads = 4
    mlp_ratio = 4.0
    num_patches = (H // patch_size) * (W // patch_size)          # 16

    key = jax.random.PRNGKey(0)
    kx, kp = jax.random.split(key)
    x = jax.random.normal(kx, (B, C, H, W), jnp.float32)

    # deterministic boolean mask: exactly 4 masked tokens per sample
    mask = jnp.zeros((B, num_patches), dtype=bool)
    mask = mask.at[0, jnp.array([1, 5, 9, 13])].set(True)
    mask = mask.at[1, jnp.array([0, 4, 8, 12])].set(True)
    n_vis = num_patches - 4                                      # 12 visible tokens

    params = init_params(kp, in_chans=C, patch_size=patch_size,
                         embed_dim=embed_dim, depth=depth, num_heads=num_heads,
                         mlp_ratio=mlp_ratio, num_patches=num_patches)

    out = encoder_forward(params, x, mask, patch_size=patch_size,
                          num_heads=num_heads, n_vis=n_vis)
    out = jax.block_until_ready(out)
    assert out.shape == (B, n_vis, embed_dim) and out.dtype == jnp.float32
    assert bool(jnp.all(jnp.isfinite(out)))
    print("KERNEL_OK")
</pallas_src>

<mosaic_0001>
module attributes {stable_mosaic.version = 11 : i64} {
  func.func @patch_embed_kernel(%arg0: i32, %arg1: memref<1x128x64xbf16, #tpu.memory_space<vmem>>, %arg2: memref<1x128x32xf32, #tpu.memory_space<vmem>>, %arg3: memref<64x32xbf16, #tpu.memory_space<vmem>>, %arg4: memref<1x32xf32, #tpu.memory_space<vmem>>, %arg5: memref<1x128x32xf32, #tpu.memory_space<vmem>>) attributes {dimension_semantics = [#tpu.dimension_semantics<parallel>], iteration_bounds = array<i64: 2>, scalar_prefetch = 0 : i64, scratch_operands = 0 : i64, tpu.core_type = #tpu.core_type<tc>, window_params = [{transform_indices = @transform_0, window_bounds = array<i64: 1, 128, 64>}, {transform_indices = @transform_1, window_bounds = array<i64: 1, 128, 32>}, {pipeline_mode = #tpu.pipeline_mode<synchronous>, transform_indices = @transform_2, window_bounds = array<i64: 64, 32>}, {pipeline_mode = #tpu.pipeline_mode<synchronous>, transform_indices = @transform_3, window_bounds = array<i64: 1, 32>}, {transform_indices = @transform_4, window_bounds = array<i64: 1, 128, 32>}]} {
    %c0 = arith.constant 0 : index
    %c0_0 = arith.constant 0 : index
    %c0_1 = arith.constant 0 : index
    %0 = vector.load %arg1[%c0, %c0_0, %c0_1] : memref<1x128x64xbf16, #tpu.memory_space<vmem>>, vector<1x128x64xbf16>
    %1 = vector.shape_cast %0 : vector<1x128x64xbf16> to vector<128x64xbf16>
    %c0_2 = arith.constant 0 : index
    %c0_3 = arith.constant 0 : index
    %2 = vector.load %arg3[%c0_2, %c0_3] : memref<64x32xbf16, #tpu.memory_space<vmem>>, vector<64x32xbf16>
    %cst = arith.constant dense<0.000000e+00> : vector<128x32xf32>
    %3 = tpu.matmul %1, %2, %cst {dimension_numbers = #tpu.dot_dimension_numbers<[1], [0], [0], [1], [0, 0, 1, 1], [], []>} : vector<128x64xbf16>, vector<64x32xbf16>, vector<128x32xf32> -> vector<128x32xf32>
    %c0_4 = arith.constant 0 : index
    %c0_5 = arith.constant 0 : index
    %4 = vector.load %arg4[%c0_4, %c0_5] : memref<1x32xf32, #tpu.memory_space<vmem>>, vector<1x32xf32>
    %5 = vector.broadcast %4 : vector<1x32xf32> to vector<128x32xf32>
    %6 = arith.addf %3, %5 : vector<128x32xf32>
    %7 = vector.shape_cast %6 : vector<128x32xf32> to vector<1x128x32xf32>
    %c0_6 = arith.constant 0 : index
    %c0_7 = arith.constant 0 : index
    %c0_8 = arith.constant 0 : index
    %8 = vector.load %arg2[%c0_6, %c0_7, %c0_8] : memref<1x128x32xf32, #tpu.memory_space<vmem>>, vector<1x128x32xf32>
    %9 = arith.addf %7, %8 : vector<1x128x32xf32>
    %c0_9 = arith.constant 0 : index
    %c0_10 = arith.constant 0 : index
    %c0_11 = arith.constant 0 : index
    %10 = vector.load %arg5[%c0_9, %c0_10, %c0_11] : memref<1x128x32xf32, #tpu.memory_space<vmem>>, vector<1x128x32xf32>
    tpu.vector_store %arg5[%c0_9, %c0_10, %c0_11], %9 {strides = array<i32>} : memref<1x128x32xf32, #tpu.memory_space<vmem>>, vector<1x128x32xf32>,
    return
  }
  func.func @transform_0(%arg0: i32) -> (i32, i32, i32) {
    %c0_i32 = arith.constant 0 : i32
    %c0_i32_0 = arith.constant 0 : i32
    %c0_i32_1 = arith.constant 0 : i32
    return %arg0, %c0_i32, %c0_i32_0 : i32, i32, i32
  }
  func.func @transform_1(%arg0: i32) -> (i32, i32, i32) {
    %c0_i32 = arith.constant 0 : i32
    %c0_i32_0 = arith.constant 0 : i32
    %c0_i32_1 = arith.constant 0 : i32
    return %arg0, %c0_i32, %c0_i32_0 : i32, i32, i32
  }
  func.func @transform_2(%arg0: i32) -> (i32, i32) {
    %c0_i32 = arith.constant 0 : i32
    %c0_i32_0 = arith.constant 0 : i32
    %c0_i32_1 = arith.constant 0 : i32
    return %c0_i32, %c0_i32_0 : i32, i32
  }
  func.func @transform_3(%arg0: i32) -> (i32, i32) {
    %c0_i32 = arith.constant 0 : i32
    %c0_i32_0 = arith.constant 0 : i32
    %c0_i32_1 = arith.constant 0 : i32
    return %c0_i32, %c0_i32_0 : i32, i32
  }
  func.func @transform_4(%arg0: i32) -> (i32, i32, i32) {
    %c0_i32 = arith.constant 0 : i32
    %c0_i32_0 = arith.constant 0 : i32
    %c0_i32_1 = arith.constant 0 : i32
    return %arg0, %c0_i32, %c0_i32_0 : i32, i32, i32
  }
}

</mosaic_0001>

<bundles_post_ra>
// kernel: tpu_custom_call.1
= control target key start
LH: loop header
LB: loop body
LE: loop exit
PB: predicated region body
PF: predicated region fallthrough
CT: control target
= control target key end

     0   :  { %s686_s15 = smov 0   ;;  %s803_s0 = inlined_call_operand.vmem [shape: bf16[2,128,64], index: 0, kind: input, shape index: {}]   ;;  %s804_s1 = inlined_call_operand.vmem [shape: f32[2,128,32], index: 1, kind: input, shape index: {}]   ;;  %s805_s2 = inlined_call_operand.vmem [shape: bf16[64,32], index: 2, kind: input, shape index: {}]   ;;  %s806_s3 = inlined_call_operand.vmem [shape: f32[1,32], index: 3, kind: input, shape index: {}]   ;;  %s807_s4 = inlined_call_operand.vmem [shape: f32[2,128,32], index: 4, kind: output, shape index: {}]  }
   0x1 LB: > { %s552_s16 = sadd.s32 4294967295, %s659_s15   ;;  %p556_p0 = scmp.ge.s32.totalorder %s659_s15, 1  ;;  %s659_s15 = sphi %s686_s15, %s14_s15  }
   0x2   : > { %p172_p1 = scmp.lt.s32.totalorder %s659_s15, 3 }
   0x4   : > { %p173_p2 = pnand %p556_p0, %p172_p1 }
   0x5   : > { %p203_p3 = scmp.lt.s32.totalorder (!%p173_p2), %s552_s16, 1 }
   0x6   : > { %176 = sbr.rel (%p173_p2) target bundleno = 240 (0xf0), region = 36 }
   0xb   : > { %v641_v0 = vld [vmem:[%s805_s2 + $0x18] sm:$0xff]   ;;  %v642_v1 = vld [vmem:[%s805_s2 + $0x10] sm:$0xff]   ;;  %s809_s16 = smov (!%p203_p3, %s552_s16), 1  ;;  %v643_v2 = vld [vmem:[%s805_s2 + $0x8] sm:$0xff]   ;;  %vm314_vm0 = vcmask 523264   ;;  %vm468_vm1 = vcmask 261120  }
   0xc   : > { %601 = vmatprep.subr.bf16.mxu0 %v641_v0  ;;  %625 = vmatprep.subr.bf16.mxu1 %v641_v0  ;;  %s586_s23 = sshll.u32 %s809_s16, 6  ;;  %v644_v5 = vld [vmem:[%s805_s2] sm:$0xff]   ;;  %s587_s29 = sshll.u32 %s809_s16, 7 }
   0xd   : > { %602 = vmatpush3.bf16.msra.mxu0 %v641_v0  ;;  %629 = vmatpush3.bf16.msra.mxu1 %v641_v0  ;;  %s207_s26 = scalar_lea.vmem %s803_s0, %s586_s23  ;;  %s724_s6 = scalar_lea.vmem %s804_s1, %s587_s29  ;;  %v729_v12 = vld [vmem:[%s806_s3] ss:$0 sm:$0xff] }
   0xe   : > { %603 = vmatprep.subr.bf16.mxu0 %v642_v1  ;;  %626 = vmatprep.subr.bf16.mxu1 %v642_v1  ;;  %v645_v3 = vld [vmem:[%s207_s26] sm:$0xff]   ;;  %v647_v6 = vld [vmem:[%s207_s26 + $0x8] sm:$0xff]   ;;  %v649_v8 = vld [vmem:[%s207_s26 + $0x10] sm:$0xff]   ;;  %s738_s11 = scalar_lea.vmem %s807_s4, %s587_s29 }
   0xf   : > { %v646_v4 = vld [vmem:[%s207_s26 + $0x20] sm:$0xff]   ;;  %609 = vmatprep.mubr.msk.bf16.mxu0 %vm314_vm0, %v645_v3  ;;  %v648_v7 = vld [vmem:[%s207_s26 + $0x28] sm:$0xff]   ;;  %v650_v9 = vld [vmem:[%s207_s26 + $0x30] sm:$0xff]  }
  0x10   : > { %617 = vmatprep.mubr.msk.bf16.mxu1 %vm314_vm0, %v646_v4  ;;  %v651_v10 = vld [vmem:[%s207_s26 + $0x18] sm:$0xff]   ;;  %v438_v14 = vld [vmem:[%s724_s6 + $0x10] sm:$0xff]  ;;  %v436_v20 = vld [vmem:[%s724_s6] sm:$0xff] }
  0x11   : > { %604 = vmatpush3.bf16.msra.mxu0 %v642_v1  ;;  %630 = vmatpush3.bf16.msra.mxu1 %v642_v1  ;;  %v652_v11 = vld [vmem:[%s207_s26 + $0x38] sm:$0xff]   ;;  %v446_v16 = vld [vmem:[%s724_s6 + $0x50] sm:$0xff]  ;;  %v444_v22 = vld [vmem:[%s724_s6 + $0x40] sm:$0xff] }
  0x12   : > { %605 = vmatprep.subr.bf16.mxu0 %v643_v2  ;;  %627 = vmatprep.subr.bf16.mxu1 %v643_v2  ;;  %v439_v28 = vld [vmem:[%s724_s6 + $0x18] sm:$0xff]  ;;  %v437_v36 = vld [vmem:[%s724_s6 + $0x8] sm:$0xff]  ;;  %v442_v44 = vld [vmem:[%s724_s6 + $0x30] sm:$0xff] }
  0x13   : > { %v447_v30 = vld [vmem:[%s724_s6 + $0x58] sm:$0xff]  ;;  %v445_v38 = vld [vmem:[%s724_s6 + $0x48] sm:$0xff]  ;;  %v450_v46 = vld [vmem:[%s724_s6 + $0x70] sm:$0xff] }
  0x14   : > { %v440_v52 = vld [vmem:[%s724_s6 + $0x20] sm:$0xff]  ;;  %v443_v60 = vld [vmem:[%s724_s6 + $0x38] sm:$0xff]  ;;  %v441_v4 = vld [vmem:[%s724_s6 + $0x28] sm:$0xff] }
  0x15   : > { %606 = vmatpush3.bf16.msra.mxu0 %v643_v2  ;;  %631 = vmatpush3.bf16.msra.mxu1 %v643_v2  ;;  %v448_v54 = vld [vmem:[%s724_s6 + $0x60] sm:$0xff]  ;;  %v451_v62 = vld [vmem:[%s724_s6 + $0x78] sm:$0xff] }
  0x16   : > { %607 = vmatprep.subr.bf16.mxu0 %v644_v5  ;;  %628 = vmatprep.subr.bf16.mxu1 %v644_v5 }
  0x19   : > { %608 = vmatpush3.bf16.msra.mxu0 %v644_v5  ;;  %632 = vmatpush3.bf16.msra.mxu1 %v644_v5 }
  0x1c   : > { %610 = vmatmul.mubr.msk.bf16.vlgmr.msra.gmra.mxu0 %vm314_vm0, %v647_v6  ;;  %618 = vmatmul.mubr.msk.bf16.vlgmr.msra.gmra.mxu1 %vm314_vm0, %v648_v7  ;;  %v449_v6 = vld [vmem:[%s724_s6 + $0x68] sm:$0xff] }
  0x1d   : > { %613 = vmatprep.mubr.msk.bf16.mxu0 %vm314_vm0, %v649_v8  ;;  %621 = vmatprep.mubr.msk.bf16.mxu1 %vm314_vm0, %v650_v9 }
  0x24   : > { %614 = vmatmul.mubr.msk.bf16.gmra.mxu0 %vm314_vm0, %v651_v10  ;;  %622 = vmatmul.mubr.msk.bf16.gmra.mxu1 %vm314_vm0, %v652_v11 }
  0xdc   : > { %v611_v13 = vpop.f32.mrf.mxu0  ;;  %v619_v15 = vpop.f32.mrf.mxu1 }
  0xdd   : > { %v382_v17 = vadd.f32 %v611_v13, %v729_v12  ;;  %v414_v18 = vadd.f32 %v619_v15, %v729_v12 }
  0xde   : > { %v373_v19 = vpop.f32.mrf.mxu0  ;;  %v405_v21 = vpop.f32.mrf.mxu1 }
  0xdf   : > { %v454_v23 = vadd.f32 %v438_v14, %v382_v17  ;;  %v462_v24 = vadd.f32 %v446_v16, %v414_v18  ;;  %v374_v25 = vadd.f32 %v729_v12, %v373_v19  ;;  %v406_v26 = vadd.f32 %v729_v12, %v405_v21 }
  0xe0   : > { %v612_v27 = vpop.f32.mrf.mxu0  ;;  %v620_v29 = vpop.f32.mrf.mxu1 }
  0xe1   : > { %471 = vst.msk [vmem:[%s738_s11 + $0x10] sm:$0xff] %vm468_vm1, %v454_v23  ;;  %479 = vst.msk [vmem:[%s738_s11 + $0x50] sm:$0xff] %vm468_vm1, %v462_v24  ;;  %v452_v31 = vadd.f32 %v436_v20, %v374_v25  ;;  %v460_v32 = vadd.f32 %v444_v22, %v406_v26  ;;  %v385_v33 = vadd.f32 %v612_v27, %v729_v12 }
  0xe2   : > { %v417_v34 = vadd.f32 %v620_v29, %v729_v12  ;;  %v376_v35 = vpop.f32.mrf.mxu0  ;;  %v408_v37 = vpop.f32.mrf.mxu1 }
  0xe3   : > { %469 = vst.msk [vmem:[%s738_s11] sm:$0xff] %vm468_vm1, %v452_v31  ;;  %477 = vst.msk [vmem:[%s738_s11 + $0x40] sm:$0xff] %vm468_vm1, %v460_v32  ;;  %v455_v39 = vadd.f32 %v439_v28, %v385_v33  ;;  %v377_v41 = vadd.f32 %v729_v12, %v376_v35  ;;  %v409_v42 = vadd.f32 %v729_v12, %v408_v37 }
  0xe4   : > { %v463_v40 = vadd.f32 %v447_v30, %v417_v34  ;;  %v615_v43 = vpop.f32.mrf.mxu0  ;;  %v623_v45 = vpop.f32.mrf.mxu1 }
  0xe5   : > { %472 = vst.msk [vmem:[%s738_s11 + $0x18] sm:$0xff] %vm468_vm1, %v455_v39  ;;  %v453_v47 = vadd.f32 %v437_v36, %v377_v41  ;;  %v461_v48 = vadd.f32 %v445_v38, %v409_v42  ;;  %v398_v49 = vadd.f32 %v615_v43, %v729_v12  ;;  %v430_v50 = vadd.f32 %v623_v45, %v729_v12 }
  0xe6   : > { %480 = vst.msk [vmem:[%s738_s11 + $0x58] sm:$0xff] %vm468_vm1, %v463_v40  ;;  %v389_v51 = vpop.f32.mrf.mxu0  ;;  %v421_v53 = vpop.f32.mrf.mxu1 }
  0xe7   : > { %470 = vst.msk [vmem:[%s738_s11 + $0x8] sm:$0xff] %vm468_vm1, %v453_v47  ;;  %478 = vst.msk [vmem:[%s738_s11 + $0x48] sm:$0xff] %vm468_vm1, %v461_v48  ;;  %v458_v55 = vadd.f32 %v442_v44, %v398_v49  ;;  %v466_v56 = vadd.f32 %v450_v46, %v430_v50  ;;  %v390_v57 = vadd.f32 %v729_v12, %v389_v51 }
  0xe8   : > { %v422_v58 = vadd.f32 %v729_v12, %v421_v53  ;;  %v616_v59 = vpop.f32.mrf.mxu0  ;;  %v624_v61 = vpop.f32.mrf.mxu1 }
  0xe9   : > { %475 = vst.msk [vmem:[%s738_s11 + $0x30] sm:$0xff] %vm468_vm1, %v458_v55  ;;  %483 = vst.msk [vmem:[%s738_s11 + $0x70] sm:$0xff] %vm468_vm1, %v466_v56  ;;  %v456_v63 = vadd.f32 %v440_v52, %v390_v57  ;;  %v401_v1 = vadd.f32 %v616_v59, %v729_v12  ;;  %v433_v2 = vadd.f32 %v624_v61, %v729_v12 }
  0xea   : > { %v464_v0 = vadd.f32 %v448_v54, %v422_v58  ;;  %v392_v3 = vpop.f32.mrf.mxu0  ;;  %v424_v5 = vpop.f32.mrf.mxu1 }
  0xeb   : > { %473 = vst.msk [vmem:[%s738_s11 + $0x20] sm:$0xff] %vm468_vm1, %v456_v63  ;;  %v459_v7 = vadd.f32 %v443_v60, %v401_v1  ;;  %v467_v8 = vadd.f32 %v451_v62, %v433_v2  ;;  %v393_v9 = vadd.f32 %v729_v12, %v392_v3  ;;  %v425_v10 = vadd.f32 %v729_v12, %v424_v5 }
  0xec   : > { %481 = vst.msk [vmem:[%s738_s11 + $0x60] sm:$0xff] %vm468_vm1, %v464_v0 }
  0xed   : > { %476 = vst.msk [vmem:[%s738_s11 + $0x38] sm:$0xff] %vm468_vm1, %v459_v7  ;;  %484 = vst.msk [vmem:[%s738_s11 + $0x78] sm:$0xff] %vm468_vm1, %v467_v8  ;;  %v457_v11 = vadd.f32 %v441_v4, %v393_v9  ;;  %v465_v13 = vadd.f32 %v449_v6, %v425_v10 }
  0xef   : > { %474 = vst.msk [vmem:[%s738_s11 + $0x28] sm:$0xff] %vm468_vm1, %v457_v11  ;;  %482 = vst.msk [vmem:[%s738_s11 + $0x68] sm:$0xff] %vm468_vm1, %v465_v13 }
  0xf0 PF: > { %s14_s15 = sadd.s32 1, %s659_s15  }
  0xf1   : > { %p11_p4 = scmp.ge.s32.totalorder %s14_s15, 4  }
  0xf3   :  { %13 = sbr.rel (!%p11_p4) target bundleno = 1 (0x1), region = 69 }

</bundles_post_ra>
